<compile_context>
chip_gen: v6e
topology: v6e:2x2x1
jax: 0.10.0
libtpu: 0.0.40
codegen_flags: <defaults>
</compile_context>

<pallas_src>
import functools
import math

import jax
import jax.numpy as jnp
from jax.experimental import pallas as pl
from jax.experimental.pallas import tpu as pltpu

# Padded hidden dims: 121->128, 242->256, 121->128. fc1 keeps K=7 (Mosaic
# zero-pads matmul operands); fc4 weight is a (1, 128) f32 row for the VPU.
_IN = 7
_H1, _H2, _H3 = 128, 256, 128


def _round_up(n, m):
    return ((n + m - 1) // m) * m


def confnet_kernel(x_ref, w1_ref, b1_ref, w2_ref, b2_ref,
                   w3_ref, b3_ref, w4_ref, b4_ref, o_ref):
    # fc1 + ReLU: (tb,7)x(7,128) on the MXU (Mosaic zero-pads K=7), f32 acc.
    # Bias + ReLU + bf16 cast fused -> only the bf16 activation is
    # materialized between layers.
    h = jnp.dot(x_ref[...].astype(jnp.bfloat16), w1_ref[...],
                preferred_element_type=jnp.float32)
    h = jnp.maximum(h + b1_ref[...], 0.0).astype(jnp.bfloat16)
    # fc2 + ReLU
    h = jnp.dot(h, w2_ref[...], preferred_element_type=jnp.float32)
    h = jnp.maximum(h + b2_ref[...], 0.0).astype(jnp.bfloat16)
    # fc3 + ReLU. Kept in f32: fc4 runs on the VPU/XLU, so no bf16 MXU
    # operand is needed and the final layer keeps full precision.
    h = jnp.dot(h, w3_ref[...], preferred_element_type=jnp.float32)
    h = jnp.maximum(h + b3_ref[...], 0.0)
    # fc4 (N=1): VPU multiply + XLU lane-sum instead of a full-width MXU pass
    # (which would be ~25% of the MXU pushes for 0.2% of the useful MACs).
    out = jnp.sum(h * w4_ref[...], axis=-1, keepdims=True) + b4_ref[...]
    # Output stays lane-narrow (tb, 1): 4 B/row writeback.
    o_ref[...] = out.astype(o_ref.dtype)


def pack_params(params):
    """One-time packing: zero-pad to MXU/vreg-friendly shapes.

    params: [(W^T (in,out), b (1,out)) for fc1..fc4], all f32.
    fc1..fc3 weights -> bf16 (MXU); fc4 -> (1,128) f32 row (VPU). Biases stay
    f32 (added to the f32 accumulator). Padding is exact zeros, so padded
    channels stay 0 through bias+ReLU and never leak into later layers.
    Call this ONCE and reuse the result across forward calls.
    """
    (w1, b1), (w2, b2), (w3, b3), (w4, b4) = params

    def pad2(a, r, c):
        out = jnp.zeros((r, c), jnp.float32)
        return out.at[:a.shape[0], :a.shape[1]].set(a)

    return [
        pad2(w1, _IN, _H1).astype(jnp.bfloat16), pad2(b1, 1, _H1),
        pad2(w2, _H1, _H2).astype(jnp.bfloat16), pad2(b2, 1, _H2),
        pad2(w3, _H2, _H3).astype(jnp.bfloat16), pad2(b3, 1, _H3),
        pad2(w4.T, 1, _H3),                      pad2(b4, 1, 1),
    ]


@functools.partial(jax.jit, static_argnames=("tb",))
def confnet_forward(x, packed, *, tb=4096):
    """x: (B, 7) f32. packed: output of pack_params(). Returns (B, 1) f32."""
    B = x.shape[0]
    w1, b1, w2, b2, w3, b3, w4, b4 = packed

    # Tile choice: big enough to amortize the ~0.35 us per-grid-step cost,
    # small enough for v7x's 64 MiB VMEM (~15-20 MiB live at tb=4096).
    # On v5e/v6e (128 MiB VMEM) tb=8192 also works.
    tb = min(tb, _round_up(B, 8))
    if B > 2048 and pl.cdiv(B, tb) < 2:
        tb = _round_up(pl.cdiv(B, 2), 8)   # >=2 steps -> v7x megacore sharding
    grid = pl.cdiv(B, tb)                  # ragged last block: padded rows are
                                           # undefined, independent, discarded.

    def resident(shape):
        # Full-array block + constant index_map -> stays in VMEM every step.
        return pl.BlockSpec(shape, lambda i: (0, 0))

    in_specs = [
        pl.BlockSpec((tb, _IN), lambda i: (i, 0)),   # x read directly, no pad copy
        resident((_IN, _H1)), resident((1, _H1)),
        resident((_H1, _H2)), resident((1, _H2)),
        resident((_H2, _H3)), resident((1, _H3)),
        resident((1, _H3)),   resident((1, 1)),
    ]

    flops = 2 * B * (_IN * _H1 + _H1 * _H2 + _H2 * _H3 + _H3)
    wbytes = sum(int(a.size) * a.dtype.itemsize for a in packed)
    cost = pl.CostEstimate(flops=flops, transcendentals=0,
                           bytes_accessed=B * (_IN * 4 + 4) + wbytes)

    return pl.pallas_call(
        confnet_kernel,
        out_shape=jax.ShapeDtypeStruct((B, 1), jnp.float32),
        grid=(grid,),
        in_specs=in_specs,
        out_specs=pl.BlockSpec((tb, 1), lambda i: (i, 0)),
        compiler_params=pltpu.CompilerParams(
            dimension_semantics=("parallel",),      # batch rows are independent
            vmem_limit_bytes=48 * 1024 * 1024),     # explicit; fits v7x's 64 MiB
        cost_estimate=cost,
    )(x, w1, b1, w2, b2, w3, b3, w4, b4)


def init_linear(key, in_features, out_features):
    """PyTorch-style nn.Linear init: U(-1/sqrt(fan_in), +1/sqrt(fan_in)).
    Returns (W transposed to (in, out), bias as (1, out)), both f32."""
    kw, kb = jax.random.split(key)
    bound = 1.0 / math.sqrt(in_features)
    w = jax.random.uniform(kw, (out_features, in_features), jnp.float32,
                           minval=-bound, maxval=bound)
    b = jax.random.uniform(kb, (out_features,), jnp.float32,
                           minval=-bound, maxval=bound)
    return w.T, b.reshape(1, out_features)


def reference_forward(x, params):
    """Full-precision f32 reference of the original PyTorch forward."""
    h = x
    for i, (w_t, b) in enumerate(params):
        h = h @ w_t + b
        if i < len(params) - 1:
            h = jnp.maximum(h, 0.0)
    return h


if __name__ == "__main__":
    key = jax.random.PRNGKey(0)
    k_x, k1, k2, k3, k4 = jax.random.split(key, 5)

    params = [
        init_linear(k1, 7, 121),
        init_linear(k2, 121, 242),
        init_linear(k3, 242, 121),
        init_linear(k4, 121, 1),
    ]
    packed = pack_params(params)   # hoisted: pack once, reuse every forward

    # Small demo batch.
    B = 8
    x = jax.random.normal(k_x, (B, 7), jnp.float32)
    out = jax.block_until_ready(confnet_forward(x, packed))
    ref = reference_forward(x, params)
    assert out.shape == (B, 1)
    # bf16 matmul operands (f32 accumulate) -> looser tolerance than pure f32.
    assert jnp.allclose(out, ref, atol=3e-2, rtol=3e-2)

    # Ragged batch (not a multiple of 8): single padded block, no host pad copy.
    B2 = 100
    x2 = jax.random.normal(k_x, (B2, 7), jnp.float32)
    out2 = jax.block_until_ready(confnet_forward(x2, packed))
    ref2 = reference_forward(x2, params)
    assert out2.shape == (B2, 1)
    assert jnp.allclose(out2, ref2, atol=3e-2, rtol=3e-2)

    # Multi-tile path with a ragged last tile (grid > 1), small tb for the demo.
    B3 = 300
    x3 = jax.random.normal(k_x, (B3, 7), jnp.float32)
    out3 = jax.block_until_ready(confnet_forward(x3, packed, tb=128))
    ref3 = reference_forward(x3, params)
    assert out3.shape == (B3, 1)
    assert jnp.allclose(out3, ref3, atol=3e-2, rtol=3e-2)

    print("KERNEL_OK")
</pallas_src>

<mosaic_0001>
module attributes {stable_mosaic.version = 11 : i64} {
  func.func @confnet_kernel(%arg0: i32, %arg1: memref<8x7xf32, #tpu.memory_space<vmem>>, %arg2: memref<7x128xbf16, #tpu.memory_space<vmem>>, %arg3: memref<1x128xf32, #tpu.memory_space<vmem>>, %arg4: memref<128x256xbf16, #tpu.memory_space<vmem>>, %arg5: memref<1x256xf32, #tpu.memory_space<vmem>>, %arg6: memref<256x128xbf16, #tpu.memory_space<vmem>>, %arg7: memref<1x128xf32, #tpu.memory_space<vmem>>, %arg8: memref<1x128xf32, #tpu.memory_space<vmem>>, %arg9: memref<1x1xf32, #tpu.memory_space<vmem>>, %arg10: memref<8x1xf32, #tpu.memory_space<vmem>>) attributes {dimension_semantics = [#tpu.dimension_semantics<parallel>], iteration_bounds = array<i64: 1>, scalar_prefetch = 0 : i64, scratch_operands = 0 : i64, tpu.core_type = #tpu.core_type<tc>, window_params = [{transform_indices = @transform_0, window_bounds = array<i64: 8, 7>}, {pipeline_mode = #tpu.pipeline_mode<synchronous>, transform_indices = @transform_1, window_bounds = array<i64: 7, 128>}, {pipeline_mode = #tpu.pipeline_mode<synchronous>, transform_indices = @transform_2, window_bounds = array<i64: 1, 128>}, {pipeline_mode = #tpu.pipeline_mode<synchronous>, transform_indices = @transform_3, window_bounds = array<i64: 128, 256>}, {pipeline_mode = #tpu.pipeline_mode<synchronous>, transform_indices = @transform_4, window_bounds = array<i64: 1, 256>}, {pipeline_mode = #tpu.pipeline_mode<synchronous>, transform_indices = @transform_5, window_bounds = array<i64: 256, 128>}, {pipeline_mode = #tpu.pipeline_mode<synchronous>, transform_indices = @transform_6, window_bounds = array<i64: 1, 128>}, {pipeline_mode = #tpu.pipeline_mode<synchronous>, transform_indices = @transform_7, window_bounds = array<i64: 1, 128>}, {pipeline_mode = #tpu.pipeline_mode<synchronous>, transform_indices = @transform_8, window_bounds = array<i64: 1, 1>}, {transform_indices = @transform_9, window_bounds = array<i64: 8, 1>}]} {
    %c0 = arith.constant 0 : index
    %c0_0 = arith.constant 0 : index
    %0 = vector.load %arg1[%c0, %c0_0] : memref<8x7xf32, #tpu.memory_space<vmem>>, vector<8x7xf32>
    %1 = arith.truncf %0 : vector<8x7xf32> to vector<8x7xbf16>
    %c0_1 = arith.constant 0 : index
    %c0_2 = arith.constant 0 : index
    %2 = vector.load %arg2[%c0_1, %c0_2] : memref<7x128xbf16, #tpu.memory_space<vmem>>, vector<7x128xbf16>
    %cst = arith.constant dense<0.000000e+00> : vector<8x128xf32>
    %3 = tpu.matmul %1, %2, %cst {dimension_numbers = #tpu.dot_dimension_numbers<[1], [0], [0], [1], [0, 0, 1, 1], [], []>} : vector<8x7xbf16>, vector<7x128xbf16>, vector<8x128xf32> -> vector<8x128xf32>
    %c0_3 = arith.constant 0 : index
    %c0_4 = arith.constant 0 : index
    %4 = vector.load %arg3[%c0_3, %c0_4] : memref<1x128xf32, #tpu.memory_space<vmem>>, vector<1x128xf32>
    %5 = vector.broadcast %4 : vector<1x128xf32> to vector<8x128xf32>
    %6 = arith.addf %3, %5 : vector<8x128xf32>
    %cst_5 = arith.constant 0.000000e+00 : f32
    %7 = vector.broadcast %cst_5 : f32 to vector<8x128xf32>
    %8 = arith.maximumf %6, %7 : vector<8x128xf32>
    %9 = arith.truncf %8 : vector<8x128xf32> to vector<8x128xbf16>
    %c0_6 = arith.constant 0 : index
    %c0_7 = arith.constant 0 : index
    %10 = vector.load %arg4[%c0_6, %c0_7] : memref<128x256xbf16, #tpu.memory_space<vmem>>, vector<128x256xbf16>
    %cst_8 = arith.constant dense<0.000000e+00> : vector<8x256xf32>
    %11 = tpu.matmul %9, %10, %cst_8 {dimension_numbers = #tpu.dot_dimension_numbers<[1], [0], [0], [1], [0, 0, 1, 1], [], []>} : vector<8x128xbf16>, vector<128x256xbf16>, vector<8x256xf32> -> vector<8x256xf32>
    %c0_9 = arith.constant 0 : index
    %c0_10 = arith.constant 0 : index
    %12 = vector.load %arg5[%c0_9, %c0_10] : memref<1x256xf32, #tpu.memory_space<vmem>>, vector<1x256xf32>
    %13 = vector.broadcast %12 : vector<1x256xf32> to vector<8x256xf32>
    %14 = arith.addf %11, %13 : vector<8x256xf32>
    %cst_11 = arith.constant 0.000000e+00 : f32
    %15 = vector.broadcast %cst_11 : f32 to vector<8x256xf32>
    %16 = arith.maximumf %14, %15 : vector<8x256xf32>
    %17 = arith.truncf %16 : vector<8x256xf32> to vector<8x256xbf16>
    %c0_12 = arith.constant 0 : index
    %c0_13 = arith.constant 0 : index
    %18 = vector.load %arg6[%c0_12, %c0_13] : memref<256x128xbf16, #tpu.memory_space<vmem>>, vector<256x128xbf16>
    %cst_14 = arith.constant dense<0.000000e+00> : vector<8x128xf32>
    %19 = tpu.matmul %17, %18, %cst_14 {dimension_numbers = #tpu.dot_dimension_numbers<[1], [0], [0], [1], [0, 0, 1, 1], [], []>} : vector<8x256xbf16>, vector<256x128xbf16>, vector<8x128xf32> -> vector<8x128xf32>
    %c0_15 = arith.constant 0 : index
    %c0_16 = arith.constant 0 : index
    %20 = vector.load %arg7[%c0_15, %c0_16] : memref<1x128xf32, #tpu.memory_space<vmem>>, vector<1x128xf32>
    %21 = vector.broadcast %20 : vector<1x128xf32> to vector<8x128xf32>
    %22 = arith.addf %19, %21 : vector<8x128xf32>
    %cst_17 = arith.constant 0.000000e+00 : f32
    %23 = vector.broadcast %cst_17 : f32 to vector<8x128xf32>
    %24 = arith.maximumf %22, %23 : vector<8x128xf32>
    %c0_18 = arith.constant 0 : index
    %c0_19 = arith.constant 0 : index
    %25 = vector.load %arg8[%c0_18, %c0_19] : memref<1x128xf32, #tpu.memory_space<vmem>>, vector<1x128xf32>
    %26 = vector.broadcast %25 : vector<1x128xf32> to vector<8x128xf32>
    %27 = arith.mulf %24, %26 : vector<8x128xf32>
    %cst_20 = arith.constant dense<0.000000e+00> : vector<8xf32>
    %28 = vector.multi_reduction <add>, %27, %cst_20 [1] : vector<8x128xf32> to vector<8xf32>
    %29 = vector.shape_cast %28 : vector<8xf32> to vector<8x1xf32>
    %c0_21 = arith.constant 0 : index
    %c0_22 = arith.constant 0 : index
    %30 = vector.load %arg9[%c0_21, %c0_22] : memref<1x1xf32, #tpu.memory_space<vmem>>, vector<1x1xf32>
    %31 = vector.broadcast %30 : vector<1x1xf32> to vector<8x1xf32>
    %32 = arith.addf %29, %31 : vector<8x1xf32>
    %c0_23 = arith.constant 0 : index
    %c0_24 = arith.constant 0 : index
    %33 = vector.load %arg10[%c0_23, %c0_24] : memref<8x1xf32, #tpu.memory_space<vmem>>, vector<8x1xf32>
    tpu.vector_store %arg10[%c0_23, %c0_24], %32 {strides = array<i32>} : memref<8x1xf32, #tpu.memory_space<vmem>>, vector<8x1xf32>,
    return
  }
  func.func @transform_0(%arg0: i32) -> (i32, i32) {
    %c0_i32 = arith.constant 0 : i32
    %c0_i32_0 = arith.constant 0 : i32
    return %arg0, %c0_i32 : i32, i32
  }
  func.func @transform_1(%arg0: i32) -> (i32, i32) {
    %c0_i32 = arith.constant 0 : i32
    %c0_i32_0 = arith.constant 0 : i32
    %c0_i32_1 = arith.constant 0 : i32
    return %c0_i32, %c0_i32_0 : i32, i32
  }
  func.func @transform_2(%arg0: i32) -> (i32, i32) {
    %c0_i32 = arith.constant 0 : i32
    %c0_i32_0 = arith.constant 0 : i32
    %c0_i32_1 = arith.constant 0 : i32
    return %c0_i32, %c0_i32_0 : i32, i32
  }
  func.func @transform_3(%arg0: i32) -> (i32, i32) {
    %c0_i32 = arith.constant 0 : i32
    %c0_i32_0 = arith.constant 0 : i32
    %c0_i32_1 = arith.constant 0 : i32
    return %c0_i32, %c0_i32_0 : i32, i32
  }
  func.func @transform_4(%arg0: i32) -> (i32, i32) {
    %c0_i32 = arith.constant 0 : i32
    %c0_i32_0 = arith.constant 0 : i32
    %c0_i32_1 = arith.constant 0 : i32
    return %c0_i32, %c0_i32_0 : i32, i32
  }
  func.func @transform_5(%arg0: i32) -> (i32, i32) {
    %c0_i32 = arith.constant 0 : i32
    %c0_i32_0 = arith.constant 0 : i32
    %c0_i32_1 = arith.constant 0 : i32
    return %c0_i32, %c0_i32_0 : i32, i32
  }
  func.func @transform_6(%arg0: i32) -> (i32, i32) {
    %c0_i32 = arith.constant 0 : i32
    %c0_i32_0 = arith.constant 0 : i32
    %c0_i32_1 = arith.constant 0 : i32
    return %c0_i32, %c0_i32_0 : i32, i32
  }
  func.func @transform_7(%arg0: i32) -> (i32, i32) {
    %c0_i32 = arith.constant 0 : i32
    %c0_i32_0 = arith.constant 0 : i32
    %c0_i32_1 = arith.constant 0 : i32
    return %c0_i32, %c0_i32_0 : i32, i32
  }
  func.func @transform_8(%arg0: i32) -> (i32, i32) {
    %c0_i32 = arith.constant 0 : i32
    %c0_i32_0 = arith.constant 0 : i32
    %c0_i32_1 = arith.constant 0 : i32
    return %c0_i32, %c0_i32_0 : i32, i32
  }
  func.func @transform_9(%arg0: i32) -> (i32, i32) {
    %c0_i32 = arith.constant 0 : i32
    %c0_i32_0 = arith.constant 0 : i32
    return %arg0, %c0_i32 : i32, i32
  }
}

</mosaic_0001>

<bundles_post_ra>
// kernel: confnet_forward.1
= control target key start
LH: loop header
LB: loop body
LE: loop exit
PB: predicated region body
PF: predicated region fallthrough
CT: control target
= control target key end

     0   :  { %s802_s0 = inlined_call_operand.hbm [shape: f32[8,7], index: 0, kind: input, shape index: {}]   ;;  %s803_s1 = inlined_call_operand.hbm [shape: bf16[7,128], index: 1, kind: input, shape index: {}]   ;;  %s804_s2 = inlined_call_operand.vmem [shape: f32[1,128], index: 2, kind: input, shape index: {}]   ;;  %s805_s3 = inlined_call_operand.hbm [shape: bf16[128,256], index: 3, kind: input, shape index: {}]   ;;  %s806_s4 = inlined_call_operand.vmem [shape: f32[1,256], index: 4, kind: input, shape index: {}]   ;;  %s807_s5 = inlined_call_operand.hbm [shape: bf16[256,128], index: 5, kind: input, shape index: {}]   ;;  %s808_s6 = inlined_call_operand.vmem [shape: f32[1,128], index: 6, kind: input, shape index: {}]   ;;  %s809_s7 = inlined_call_operand.vmem [shape: f32[1,128], index: 7, kind: input, shape index: {}]   ;;  %s810_s8 = inlined_call_operand.<no memory space> [shape: f32[1,1], index: 8, kind: input, shape index: {}]   ;;  %s811_s9 = inlined_call_operand.vmem [shape: f32[8,1], index: 9, kind: output, shape index: {}]  }
   0x1   :  { %v14_v0 = vstv %s810_s8 }
   0x2   :  { %15 = vst [vmem:[#allocation2] sm:$0x1] %v14_v0 }
   0x3   :  { %16 = vsyncpa [#allocation4], 0 }
   0x4   :  { %17 = vsyncpa [#allocation6], 0 }
   0x5   :  { %18 = vsyncpa [#allocation9], 0  ;;  %s710_s11 = smov [#allocation5]   ;;  %s711_s13 = smov [#allocation3]  }
   0x6   :  { %s35_s12 = sshll.u32 %s710_s11, 4  ;;  %s25_s14 = sshll.u32 %s711_s13, 4  ;;  %s36_s12 = int_to_ptr.vmem [resolvable:$true] %s35_s12  ;;  %s26_s14 = int_to_ptr.vmem [resolvable:$true] %s25_s14 }
   0x7   :  { %s632_s15 = scalar_lea.vmem %s36_s12, 64  ;;  %p637_p1 = scmp.lt.s32.totalorder %s36_s12, %s36_s12 }
   0x8   :  { %p633_p0 = scmp.ne.s32.totalorder %s36_s12, %s632_s15  ;;  %p638_p2 = scmp.lt.s32.totalorder %s632_s15, %s632_s15 }
   0xa   :  { %p639_p3 = por %p638_p2, %p637_p1 }
   0xc   :  { %p640_p4 = pnand %p639_p3, %p633_p0 }
   0xe   :  { %643 = shalt.err (!%p640_p4)
}
   0xf   :  { %38 = dma.hbm_to_vmem [thread:$0]  %s803_s1, 64, %s36_s12, [#allocation6]  }
  0x10   :  { %s652_s8 = scalar_lea.vmem %s26_s14, 128  ;;  %p657_p6 = scmp.lt.s32.totalorder %s26_s14, %s26_s14 }
  0x11   :  { %p653_p5 = scmp.ne.s32.totalorder %s26_s14, %s652_s8  ;;  %p658_p7 = scmp.lt.s32.totalorder %s652_s8, %s652_s8 }
  0x13   :  { %p659_p8 = por %p658_p7, %p657_p6 }
  0x15   :  { %p660_p9 = pnand %p659_p8, %p653_p5 }
  0x17   :  { %663 = shalt.err (!%p660_p9)
}
  0x18   :  { %28 = dma.hbm_to_vmem [thread:$0]  %s802_s0, 128, %s26_s14, [#allocation4]  }
  0x19   :  { %s712_s20 = smov [#allocation7]  }
  0x1a   :  { %s46_s21 = sshll.u32 %s712_s20, 4  ;;  %s47_s21 = int_to_ptr.vmem [resolvable:$true] %s46_s21 }
  0x1b   :  { %s672_s22 = scalar_lea.vmem %s47_s21, 2048  ;;  %p677_p11 = scmp.lt.s32.totalorder %s47_s21, %s47_s21 }
  0x1c   :  { %p673_p10 = scmp.ne.s32.totalorder %s47_s21, %s672_s22  ;;  %p678_p12 = scmp.lt.s32.totalorder %s672_s22, %s672_s22 }
  0x1e   :  { %p679_p13 = por %p678_p12, %p677_p11 }
  0x20   :  { %p680_p0 = pnand %p679_p13, %p673_p10 }
  0x22   :  { %683 = shalt.err (!%p680_p0)
}
  0x23   :  { %s713_s1 = smov 128   ;;  %s714_s23 = smov 8  }
  0x24   :  { %52 = dma.hbm_to_vmem [thread:$0]  %s805_s3, 2048, %s47_s21, [#allocation6], %s713_s1, %s713_s1, %s714_s23  }
  0x25   :  { %s715_s26 = smov [#allocation8]  }
  0x26   :  { %s60_s27 = sshll.u32 %s715_s26, 4  ;;  %s61_s27 = int_to_ptr.vmem [resolvable:$true] %s60_s27 }
  0x27   :  { %s692_s0 = scalar_lea.vmem %s61_s27, 2048  ;;  %p697_p2 = scmp.lt.s32.totalorder %s61_s27, %s61_s27 }
  0x28   :  { %p693_p1 = scmp.ne.s32.totalorder %s61_s27, %s692_s0  ;;  %p698_p3 = scmp.lt.s32.totalorder %s692_s0, %s692_s0 }
  0x2a   :  { %p699_p4 = por %p698_p3, %p697_p2 }
  0x2c   :  { %p700_p5 = pnand %p699_p4, %p693_p1 }
  0x2e   :  { %703 = shalt.err (!%p700_p5)
}
  0x2f   :  { %s716_s28 = smov 64   ;;  %s717_s29 = smov 4  }
  0x30   :  { %66 = dma.hbm_to_vmem [thread:$0]  %s807_s5, 2048, %s61_s27, [#allocation9], %s716_s28, %s716_s28, %s717_s29  }
  0x31   :  { %704 = dma.done.wait [#allocation4], 128  }
  0x32   :  { %705 = vsyncadd [#allocation4], 4294967168 }
  0x33   :  { %706 = dma.done.wait [#allocation6], 2112  }
  0x34   :  { %707 = vsyncadd [#allocation6], 4294965184 }
  0x35   :  { %708 = dma.done.wait [#allocation9], 2048  }
  0x36   :  { %709 = vsyncadd [#allocation9], 4294965248  ;;  %vm100_vm0 = vcmask 1042432   ;;  %v718_v1 = vmov 0.0   ;;  %vm101_vm1 = vcmask 1043456   ;;  %v719_v2 = vmov 65535  }
  0x37   :  { %566 = vmatprep.subr.bf16.mxu0 %v718_v1  ;;  %v102_v3 = vsel %vm100_vm0, 4294967295, %v719_v2  ;;  %vm720_vm2 = vmmov 0   ;;  %v88_v5 = vld [vmem:[#allocation5] sm:$0xf]  ;;  %v86_v6 = vld [vmem:[#allocation3] sm:$0xff]  ;;  %vm96_vm3 = vcmask 56320   ;;  %v167_v50 = vlaneseq }
  0x38   :  { %568 = vmatprep.mubr.msk.bf16.mxu0 %vm720_vm2, %v718_v1  ;;  %v103_v4 = vsel %vm101_vm1, %v102_v3, 0  ;;  %v584_v8 = vld [vmem:[#allocation7 + $0x74] ss:$8 sps:$4 sm:$0xff]   ;;  %v586_v9 = vld [vmem:[#allocation7 + $0x70] ss:$8 sps:$4 sm:$0xff]   ;;  %v87_v10 = vpack.c.bf16 %v86_v6, %v86_v6  ;;  %v721_v25 = vmov 0  }
  0x39   :  { %v105_v7 = vand.u32 %v103_v4, %v88_v5  ;;  %v587_v11 = vld [vmem:[#allocation7 + $0x64] ss:$8 sps:$4 sm:$0xff]   ;;  %257 = vmatprep.subr.bf16.mxu1 %v584_v8  ;;  %v589_v12 = vld [vmem:[#allocation7 + $0x60] ss:$8 sps:$4 sm:$0xff]   ;;  %v590_v13 = vld [vmem:[#allocation7 + $0x54] ss:$8 sps:$4 sm:$0xff]   ;;  %289 = vmatprep.mubr.bf16.mxu1 %v721_v25 }
  0x3a   :  { %258 = vmatpush1.bf16.msra.mxu1 %v586_v9  ;;  %v592_v14 = vld [vmem:[#allocation7 + $0x50] ss:$8 sps:$4 sm:$0xff]   ;;  %v593_v15 = vld [vmem:[#allocation7 + $0x44] ss:$8 sps:$4 sm:$0xff]   ;;  %v595_v16 = vld [vmem:[#allocation7 + $0x40] ss:$8 sps:$4 sm:$0xff]  }
  0x3b   :  { %567 = vmatpush3.bf16.msra.mxu0 %v105_v7  ;;  %259 = vmatprep.subr.bf16.mxu1 %v587_v11  ;;  %v596_v17 = vld [vmem:[#allocation7 + $0x34] ss:$8 sps:$4 sm:$0xff]   ;;  %v598_v18 = vld [vmem:[#allocation7 + $0x30] ss:$8 sps:$4 sm:$0xff]   ;;  %v599_v19 = vld [vmem:[#allocation7 + $0x24] ss:$8 sps:$4 sm:$0xff]  }
  0x3c   :  { %v601_v20 = vld [vmem:[#allocation7 + $0x20] ss:$8 sps:$4 sm:$0xff]   ;;  %v602_v21 = vld [vmem:[#allocation7 + $0x14] ss:$8 sps:$4 sm:$0xff]   ;;  %v604_v22 = vld [vmem:[#allocation7 + $0x10] ss:$8 sps:$4 sm:$0xff]  }
  0x3d   :  { %v605_v23 = vld [vmem:[#allocation7 + $0x4] ss:$8 sps:$4 sm:$0xff]   ;;  %v607_v24 = vld [vmem:[#allocation7] ss:$8 sps:$4 sm:$0xff]   ;;  %v608_v26 = vld [vmem:[#allocation8 + $0x78] sm:$0xff]   ;;  %v168_v51 = vshrl.u32 %v167_v50, 7 }
  0x3e   :  { %569 = vmatmul.mubr.msk.bf16.vlgmr.msra.gmra.mxu0 %vm96_vm3, %v87_v10  ;;  %260 = vmatpush1.bf16.msra.mxu1 %v589_v12  ;;  %v609_v27 = vld [vmem:[#allocation8 + $0x38] sm:$0xff]   ;;  %v610_v28 = vld [vmem:[#allocation8 + $0x70] sm:$0xff]   ;;  %v612_v30 = vld [vmem:[#allocation8 + $0x68] sm:$0xff]   ;;  %vm496_vm4 = vcmask 7168  }
  0x3f   :  { %261 = vmatprep.subr.bf16.mxu1 %v590_v13  ;;  %544 = vmatprep.subr.bf16.mxu0 %v608_v26  ;;  %v611_v29 = vld [vmem:[#allocation8 + $0x30] sm:$0xff]   ;;  %v613_v31 = vld [vmem:[#allocation8 + $0x28] sm:$0xff]   ;;  %v614_v32 = vld [vmem:[#allocation8 + $0x60] sm:$0xff]   ;;  %v169_v52 = vsub.s32 0, %v168_v51  ;;  %v173_v54 = vsub.s32 1, %v168_v51 }
  0x40   :  { %545 = vmatpush3.bf16.msra.mxu0 %v609_v27  ;;  %v615_v33 = vld [vmem:[#allocation8 + $0x20] sm:$0xff]   ;;  %v616_v34 = vld [vmem:[#allocation8 + $0x58] sm:$0xff]   ;;  %v618_v36 = vld [vmem:[#allocation8 + $0x50] sm:$0xff]  }
  0x41   :  { %546 = vmatprep.subr.bf16.mxu0 %v610_v28  ;;  %v617_v35 = vld [vmem:[#allocation8 + $0x18] sm:$0xff]   ;;  %v619_v37 = vld [vmem:[#allocation8 + $0x10] sm:$0xff]   ;;  %v620_v46 = vld [vmem:[#allocation8 + $0x48] sm:$0xff]  }
  0x42   :  { %262 = vmatpush1.bf16.msra.mxu1 %v592_v14  ;;  %v505_v38 = vld [vmem:[%s804_s2] ss:$0 sm:$0xff]  ;;  %v621_v47 = vld [vmem:[#allocation8 + $0x8] sm:$0xff]   ;;  %v622_v48 = vld [vmem:[#allocation8 + $0x40] sm:$0xff]  }
  0x43   :  { %263 = vmatprep.subr.bf16.mxu1 %v593_v15  ;;  %v623_v49 = vld [vmem:[#allocation8] sm:$0xff]   ;;  %v165_v53 = vld [vmem:[%s806_s4] sm:$0x3] }
  0x44   :  { %547 = vmatpush3.bf16.msra.mxu0 %v611_v29  ;;  %v170_v55 = vrot.slane %v165_v53, %v169_v52  ;;  %v174_v56 = vrot.slane %v165_v53, %v173_v54  ;;  %v523_v5 = vld [vmem:[%s808_s6] ss:$0 sm:$0xff] }
  0x45   :  { %548 = vmatprep.subr.bf16.mxu0 %v612_v30  ;;  %v540_v10 = vld [vmem:[%s809_s7] ss:$0 sm:$0xff] }
  0x46   :  { %264 = vmatpush1.bf16.msra.mxu1 %v595_v16  ;;  %v541_v13 = vld [vmem:[#allocation2] ss:$0 sm:$0xff] }
  0x47   :  { %265 = vmatprep.subr.bf16.mxu1 %v596_v17 }
  0x48   :  { %549 = vmatpush3.bf16.msra.mxu0 %v613_v31 }
  0x49   :  { %550 = vmatprep.subr.bf16.mxu0 %v614_v32 }
  0x4a   :  { %266 = vmatpush1.bf16.msra.mxu1 %v598_v18 }
  0x4b   :  { %267 = vmatprep.subr.bf16.mxu1 %v599_v19 }
  0x4c   :  { %551 = vmatpush3.bf16.msra.mxu0 %v615_v33 }
  0x4d   :  { %552 = vmatprep.subr.bf16.mxu0 %v616_v34 }
  0x4e   :  { %268 = vmatpush1.bf16.msra.mxu1 %v601_v20 }
  0x4f   :  { %269 = vmatprep.subr.bf16.mxu1 %v602_v21 }
  0x50   :  { %553 = vmatpush3.bf16.msra.mxu0 %v617_v35 }
  0x51   :  { %554 = vmatprep.subr.bf16.mxu0 %v618_v36 }
  0x52   :  { %270 = vmatpush1.bf16.msra.mxu1 %v604_v22 }
  0x53   :  { %271 = vmatprep.subr.bf16.mxu1 %v605_v23 }
  0x54   :  { %555 = vmatpush3.bf16.msra.mxu0 %v619_v37 }
  0x55   :  { %556 = vmatprep.subr.bf16.mxu0 %v620_v46 }
  0x56   :  { %272 = vmatpush1.bf16.msra.mxu1 %v607_v24 }
  0x58   :  { %557 = vmatpush3.bf16.msra.mxu0 %v621_v47 }
  0x59   :  { %558 = vmatprep.subr.bf16.mxu0 %v622_v48 }
  0x5c   :  { %559 = vmatpush3.bf16.msra.mxu0 %v623_v49 }
  0xfe   :  { %v141_v39 = vpop.f32.mrf.mxu0 }
  0xff   :  { %v142_v40 = vadd.f32 %v505_v38, %v141_v39 }
 0x100   :  { %v570_v41 = vpop.f32.mrf.mxu0 }
 0x101   :  { %v147_v42 = vmax.f32 %v142_v40, 0.0 }
 0x102   :  { %v144_v43 = vpop.f32.mrf.mxu0 }
 0x103   :  { %v148_v44 = vpack.c.bf16 %v147_v42, %v147_v42 }
 0x104   :  { %v571_v45 = vpop.f32.mrf.mxu0 }
 0x105   :  { %290 = vmatmul.mubr.bf16.vlgmr.msra.gmra.mxu1 %v148_v44 }
 0x1c5   :  { %v291_v57 = vpop.f32.mrf.mxu1 }
 0x1c6   :  { %v292_v58 = vadd.f32 %v291_v57, %v170_v55 }
 0x1c7   :  { %v293_v59 = vpop.f32.mrf.mxu1 }
 0x1c8   :  { %v294_v60 = vadd.f32 %v293_v59, %v174_v56  ;;  %v298_v61 = vmax.f32 %v292_v58, 0.0 }
 0x1c9   :  { %v295_v62 = vpop.f32.mrf.mxu1 }
 0x1ca   :  { %v299_v63 = vmax.f32 %v294_v60, 0.0  ;;  %v300_v2 = vpack.c.bf16 %v298_v61, %v298_v61 }
 0x1cb   :  { %v296_v0 = vpop.f32.mrf.mxu1 }
 0x1cc   :  { %v301_v1 = vpack.c.bf16 %v299_v63, %v299_v63 }
 0x1ce   :  { %469 = vmatprep.mubr.bf16.mxu0 %v301_v1 }
 0x1cf   :  { %470 = vmatmul.mubr.bf16.vlgmr.msra.gmra.mxu0 %v300_v2 }
 0x28f   :  { %v560_v3 = vpop.f32.mrf.mxu0 }
 0x291   :  { %v561_v4 = vpop.f32.mrf.mxu0 }
 0x292   :  { %v562_v6 = vadd.f32 %v561_v4, %v560_v3 }
 0x293   :  { %v563_v7 = vpop.f32.mrf.mxu0 }
 0x294   :  { %v472_v8 = vadd.f32 %v562_v6, %v523_v5 }
 0x295   :  { %v564_v9 = vpop.f32.mrf.mxu0 }
 0x296   :  { %v477_v11 = vmax.f32 %v472_v8, 0.0 }
 0x298   :  { %v485_v12 = vmul.f32 %v540_v10, %v477_v11 }
 0x29a   :  { %486 = vadd.xlane.f32.xlu0 %v485_v12 }
 0x323   :  { %v487_v14 = vpop.xlane.xlu0 %486 }
 0x324   :  { %v495_v15 = vadd.f32 %v541_v13, %v487_v14 }
 0x326   :  { %497 = vst.msk [vmem:[%s811_s9] sm:$0xff] %vm496_vm4, %v495_v15 }
 0x327   :  { %502 = vsyncpa [#allocation4], 1 }
 0x328   :  { %503 = vsyncpa [#allocation6], 1 }
 0x329   :  { %504 = vsyncpa [#allocation9], 1 }

</bundles_post_ra>
